<compile_context>
chip_gen: v7x
topology: tpu7x:2x2x1
jax: 0.10.0
libtpu: 0.0.40
codegen_flags: <defaults>
</compile_context>

<pallas_src>
import functools

import jax
import jax.numpy as jnp
from jax.experimental import pallas as pl
from jax.experimental.pallas import tpu as pltpu


def _spar_loss_kernel(ft_ref, fm_ref, fo_ref, c1_ref, fc_ref, out_ref, *,
                      batch_size, den_target, lbda):
    """ft_ref: (N, L)  flops_tensor  (any float dtype; upcast in-kernel)
    fm_ref: (N, L)  flops_mask
    fo_ref: (N, L)  flops_ori
    c1_ref: (1, Nc) flops_conv1
    fc_ref: (1, Nf) flops_fc
    out_ref: (1,)   f32 SMEM scalar loss
    batch_size / den_target / lbda: static Python scalars
      (batch_size is pre-clamped to [1, N] by the wrapper).
    """
    n_rows = ft_ref.shape[0]
    nc = c1_ref.shape[-1]
    nf = fc_ref.shape[-1]

    # flops_tensor[0:bs, :].mean(0).sum()  == sum(static slice) * (1/bs)
    flops_conv = (jnp.sum(ft_ref[pl.ds(0, batch_size), :].astype(jnp.float32))
                  * jnp.float32(1.0 / batch_size))
    # flops_mask.mean(0).sum()
    flops_mask_s = (jnp.sum(fm_ref[...].astype(jnp.float32))
                    * jnp.float32(1.0 / n_rows))
    # flops_ori.mean(0).sum()
    flops_ori_s = (jnp.sum(fo_ref[...].astype(jnp.float32))
                   * jnp.float32(1.0 / n_rows))
    # flops_conv1.mean() + flops_fc.mean()
    head_tail = (jnp.sum(c1_ref[...].astype(jnp.float32)) * jnp.float32(1.0 / nc)
                 + jnp.sum(fc_ref[...].astype(jnp.float32)) * jnp.float32(1.0 / nf))

    flops_ori_total = flops_ori_s + head_tail
    flops_real_total = flops_conv + flops_mask_s + head_tail

    ratio = flops_real_total / flops_ori_total
    out_ref[0] = jnp.float32(lbda) * (ratio - jnp.float32(den_target)) ** 2


def spar_loss(flops_real, flops_mask, flops_ori, batch_size, den_target, lbda):
    """flops_real = (flops_tensor [N,L], flops_conv1 [N], flops_fc [N])."""
    flops_tensor, flops_conv1, flops_fc = flops_real
    N, L = flops_tensor.shape

    # batch_size must be a static Python int (it selects a static slice).
    try:
        bs = int(batch_size)
    except (TypeError,
            jax.errors.ConcretizationTypeError,
            jax.errors.TracerIntegerConversionError) as e:
        raise TypeError(
            "spar_loss: batch_size must be a static Python int, got a traced "
            "value") from e
    # Clamp to [1, N]: matches PyTorch slicing for batch_size >= N and avoids
    # the NaN PyTorch would produce from an empty-slice mean for bs <= 0.
    bs = max(1, min(bs, N))

    # den_target / lbda are Python floats in this module's usage; bake them
    # into the kernel (float() raises clearly if they are traced).
    den_target_f = float(den_target)
    lbda_f = float(lbda)

    # Metadata-only reshapes (no HBM copy): keep the vectors lane-major 2-D.
    conv1 = flops_conv1.reshape(1, -1)
    fc = flops_fc.reshape(1, -1)

    kernel = functools.partial(_spar_loss_kernel, batch_size=bs,
                               den_target=den_target_f, lbda=lbda_f)

    inputs = (flops_tensor, flops_mask, flops_ori, conv1, fc)
    in_bytes = sum(int(x.size) * x.dtype.itemsize for x in inputs)
    cost = pl.CostEstimate(
        flops=3 * N * L + conv1.size + fc.size + 16,
        transcendentals=0,
        bytes_accessed=in_bytes + 4,
    )

    vmem = pl.BlockSpec(memory_space=pltpu.MemorySpace.VMEM)
    out = pl.pallas_call(
        kernel,
        out_shape=jax.ShapeDtypeStruct((1,), jnp.float32),
        in_specs=[vmem] * len(inputs),
        out_specs=pl.BlockSpec(memory_space=pltpu.MemorySpace.SMEM),
        cost_estimate=cost,
    )(*inputs)
    return out[0]  # scalar, matching the PyTorch module's return value


def spar_loss_ref(flops_real, flops_mask, flops_ori, batch_size, den_target, lbda):
    """Pure-JAX reference mirroring the PyTorch module (recommended for prod)."""
    flops_tensor, flops_conv1, flops_fc = flops_real
    flops_conv = flops_tensor[0:batch_size, :].mean(0).sum()
    flops_mask_s = flops_mask.mean(0).sum()
    flops_ori_s = flops_ori.mean(0).sum() + flops_conv1.mean() + flops_fc.mean()
    flops_real_s = flops_conv + flops_mask_s + flops_conv1.mean() + flops_fc.mean()
    return lbda * (flops_real_s / flops_ori_s - den_target) ** 2


if __name__ == "__main__":
    key = jax.random.PRNGKey(0)
    k1, k2, k3, k4, k5 = jax.random.split(key, 5)

    N, L = 8, 16          # N rows (batch-sized buffer), L layers
    batch_size = 4
    den_target = 0.5
    lbda = 5.0

    # Positive "flops" values, deterministic.
    flops_tensor = jax.random.uniform(k1, (N, L), jnp.float32, 1.0, 10.0)
    flops_conv1 = jax.random.uniform(k2, (N,), jnp.float32, 1.0, 10.0)
    flops_fc = jax.random.uniform(k3, (N,), jnp.float32, 1.0, 10.0)
    flops_mask = jax.random.uniform(k4, (N, L), jnp.float32, 0.0, 5.0)
    flops_ori = jax.random.uniform(k5, (N, L), jnp.float32, 5.0, 20.0)

    flops_real = (flops_tensor, flops_conv1, flops_fc)

    rloss = spar_loss(flops_real, flops_mask, flops_ori,
                      batch_size, den_target, lbda)
    rloss = jax.block_until_ready(rloss)

    expected = spar_loss_ref(flops_real, flops_mask, flops_ori,
                             batch_size, den_target, lbda)
    assert jnp.allclose(rloss, expected, rtol=1e-5, atol=1e-6), (rloss, expected)

    print("KERNEL_OK")
</pallas_src>

<mosaic_0001>
module attributes {stable_mosaic.version = 11 : i64} {
  func.func @_spar_loss_kernel(%arg0: memref<8x16xf32, #tpu.memory_space<vmem>>, %arg1: memref<8x16xf32, #tpu.memory_space<vmem>>, %arg2: memref<8x16xf32, #tpu.memory_space<vmem>>, %arg3: memref<1x8xf32, #tpu.memory_space<vmem>>, %arg4: memref<1x8xf32, #tpu.memory_space<vmem>>, %arg5: memref<1xf32, #tpu.memory_space<smem>>) attributes {dimension_semantics = [], scalar_prefetch = 0 : i64, scratch_operands = 0 : i64, tpu.core_type = #tpu.core_type<tc>} {
    %c0 = arith.constant 0 : index
    %c0_0 = arith.constant 0 : index
    %0 = vector.load %arg0[%c0, %c0_0] : memref<8x16xf32, #tpu.memory_space<vmem>>, vector<4x16xf32>
    %1 = vector.shape_cast %0 : vector<4x16xf32> to vector<1x4x16xf32>
    %cst = arith.constant dense<0.000000e+00> : vector<1xf32>
    %2 = vector.multi_reduction <add>, %1, %cst [1, 2] : vector<1x4x16xf32> to vector<1xf32>
    %3 = vector.shape_cast %2 : vector<1xf32> to vector<1x1x1xf32>
    %4 = vector.extract %3[0, 0, 0] : f32 from vector<1x1x1xf32>
    %cst_1 = arith.constant 2.500000e-01 : f32
    %5 = arith.mulf %4, %cst_1 : f32
    %c0_2 = arith.constant 0 : index
    %c0_3 = arith.constant 0 : index
    %6 = vector.load %arg1[%c0_2, %c0_3] : memref<8x16xf32, #tpu.memory_space<vmem>>, vector<8x16xf32>
    %7 = vector.shape_cast %6 : vector<8x16xf32> to vector<1x8x16xf32>
    %cst_4 = arith.constant dense<0.000000e+00> : vector<1xf32>
    %8 = vector.multi_reduction <add>, %7, %cst_4 [1, 2] : vector<1x8x16xf32> to vector<1xf32>
    %9 = vector.shape_cast %8 : vector<1xf32> to vector<1x1x1xf32>
    %10 = vector.extract %9[0, 0, 0] : f32 from vector<1x1x1xf32>
    %cst_5 = arith.constant 1.250000e-01 : f32
    %11 = arith.mulf %10, %cst_5 : f32
    %c0_6 = arith.constant 0 : index
    %c0_7 = arith.constant 0 : index
    %12 = vector.load %arg2[%c0_6, %c0_7] : memref<8x16xf32, #tpu.memory_space<vmem>>, vector<8x16xf32>
    %13 = vector.shape_cast %12 : vector<8x16xf32> to vector<1x8x16xf32>
    %cst_8 = arith.constant dense<0.000000e+00> : vector<1xf32>
    %14 = vector.multi_reduction <add>, %13, %cst_8 [1, 2] : vector<1x8x16xf32> to vector<1xf32>
    %15 = vector.shape_cast %14 : vector<1xf32> to vector<1x1x1xf32>
    %16 = vector.extract %15[0, 0, 0] : f32 from vector<1x1x1xf32>
    %cst_9 = arith.constant 1.250000e-01 : f32
    %17 = arith.mulf %16, %cst_9 : f32
    %c0_10 = arith.constant 0 : index
    %c0_11 = arith.constant 0 : index
    %18 = vector.load %arg3[%c0_10, %c0_11] : memref<1x8xf32, #tpu.memory_space<vmem>>, vector<1x8xf32>
    %19 = vector.shape_cast %18 : vector<1x8xf32> to vector<1x1x8xf32>
    %cst_12 = arith.constant dense<0.000000e+00> : vector<1xf32>
    %20 = vector.multi_reduction <add>, %19, %cst_12 [1, 2] : vector<1x1x8xf32> to vector<1xf32>
    %21 = vector.shape_cast %20 : vector<1xf32> to vector<1x1x1xf32>
    %22 = vector.extract %21[0, 0, 0] : f32 from vector<1x1x1xf32>
    %cst_13 = arith.constant 1.250000e-01 : f32
    %23 = arith.mulf %22, %cst_13 : f32
    %c0_14 = arith.constant 0 : index
    %c0_15 = arith.constant 0 : index
    %24 = vector.load %arg4[%c0_14, %c0_15] : memref<1x8xf32, #tpu.memory_space<vmem>>, vector<1x8xf32>
    %25 = vector.shape_cast %24 : vector<1x8xf32> to vector<1x1x8xf32>
    %cst_16 = arith.constant dense<0.000000e+00> : vector<1xf32>
    %26 = vector.multi_reduction <add>, %25, %cst_16 [1, 2] : vector<1x1x8xf32> to vector<1xf32>
    %27 = vector.shape_cast %26 : vector<1xf32> to vector<1x1x1xf32>
    %28 = vector.extract %27[0, 0, 0] : f32 from vector<1x1x1xf32>
    %cst_17 = arith.constant 1.250000e-01 : f32
    %29 = arith.mulf %28, %cst_17 : f32
    %30 = arith.addf %23, %29 : f32
    %31 = arith.addf %17, %30 : f32
    %32 = arith.addf %5, %11 : f32
    %33 = arith.addf %32, %30 : f32
    %34 = arith.divf %33, %31 : f32
    %cst_18 = arith.constant 5.000000e-01 : f32
    %35 = arith.subf %34, %cst_18 : f32
    %36 = arith.mulf %35, %35 : f32
    %cst_19 = arith.constant 5.000000e+00 : f32
    %37 = arith.mulf %cst_19, %36 : f32
    %c0_20 = arith.constant 0 : index
    %38 = memref.load %arg5[%c0_20] : memref<1xf32, #tpu.memory_space<smem>>
    memref.store %37, %arg5[%c0_20] : memref<1xf32, #tpu.memory_space<smem>>
    return
  }
}

</mosaic_0001>

<bundles_post_ra>
// kernel: tpu_custom_call.1
= control target key start
LH: loop header
LB: loop body
LE: loop exit
PB: predicated region body
PF: predicated region fallthrough
CT: control target
= control target key end

     0   :  { %10 = vsyncpa [#allocation3], 0  ;;  %s336_s0 = inlined_call_operand.hbm [shape: f32[8,16], index: 0, kind: input, shape index: {}]   ;;  %s337_s1 = inlined_call_operand.hbm [shape: f32[8,16], index: 1, kind: input, shape index: {}]   ;;  %s338_s2 = inlined_call_operand.hbm [shape: f32[8,16], index: 2, kind: input, shape index: {}]   ;;  %s339_s3 = inlined_call_operand.vmem [shape: f32[1,8], index: 3, kind: input, shape index: {}]   ;;  %s340_s4 = inlined_call_operand.vmem [shape: f32[1,8], index: 4, kind: input, shape index: {}]   ;;  %s341_s5 = inlined_call_operand.hbm [shape: f32[1], index: 5, kind: output, shape index: {}]  }
   0x1   :  { %11 = vsyncpa [#allocation6], 0 }
   0x2   :  { %12 = vsyncpa [#allocation4], 0  ;;  %s248_s18 = smov [#allocation5]   ;;  %s249_s20 = smov [#allocation2]  }
   0x3   :  { %s29_s19 = sshll.u32 %s248_s18, 4  ;;  %s19_s21 = sshll.u32 %s249_s20, 4  ;;  %s30_s19 = int_to_ptr.vmem [resolvable:$true] %s29_s19  ;;  %s20_s21 = int_to_ptr.vmem [resolvable:$true] %s19_s21 }
   0x4   :  { %s166_s24 = scalar_lea.hbm %s337_s1, 128 }
   0x5   :  { %p167_p0 = scmp.ne.s32.totalorder %s337_s1, %s166_s24  ;;  %p170_p1 = scmp.lt.u32.totalorder %s166_s24, %s337_s1 }
   0x7   :  { %p172_p2 = pnand %p170_p1, %p167_p0 }
   0x9   :  { %175 = shalt.err (!%p172_p2)
}
   0xa   :  { %s176_s29 = scalar_lea.vmem %s30_s19, 128  ;;  %p181_p4 = scmp.lt.s32.totalorder %s30_s19, %s30_s19 }
   0xb   :  { %p177_p3 = scmp.ne.s32.totalorder %s30_s19, %s176_s29  ;;  %p182_p5 = scmp.lt.s32.totalorder %s176_s29, %s176_s29 }
   0xd   :  { %p183_p6 = por %p182_p5, %p181_p4 }
   0xf   :  { %p184_p7 = pnand %p183_p6, %p177_p3 }
  0x11   :  { %187 = shalt.err (!%p184_p7)
}
  0x12   :  { %32 = dma.hbm_to_vmem [thread:$0]  %s337_s1, 128, %s30_s19, [#allocation6]  }
  0x13   :  { %s188_s9 = scalar_lea.hbm %s336_s0, 128 }
  0x14   :  { %p189_p8 = scmp.ne.s32.totalorder %s336_s0, %s188_s9  ;;  %p192_p9 = scmp.lt.u32.totalorder %s188_s9, %s336_s0 }
  0x16   :  { %p194_p10 = pnand %p192_p9, %p189_p8 }
  0x18   :  { %197 = shalt.err (!%p194_p10)
}
  0x19   :  { %s198_s14 = scalar_lea.vmem %s20_s21, 128  ;;  %p203_p12 = scmp.lt.s32.totalorder %s20_s21, %s20_s21 }
  0x1a   :  { %p199_p11 = scmp.ne.s32.totalorder %s20_s21, %s198_s14  ;;  %p204_p13 = scmp.lt.s32.totalorder %s198_s14, %s198_s14 }
  0x1c   :  { %p205_p0 = por %p204_p13, %p203_p12 }
  0x1e   :  { %p206_p1 = pnand %p205_p0, %p199_p11 }
  0x20   :  { %209 = shalt.err (!%p206_p1)
}
  0x21   :  { %22 = dma.hbm_to_vmem [thread:$0]  %s336_s0, 128, %s20_s21, [#allocation3]  }
  0x22   :  { %s250_s16 = smov [#allocation7]   ;;  %s210_s20 = scalar_lea.hbm %s338_s2, 128 }
  0x23   :  { %s39_s17 = sshll.u32 %s250_s16, 4  ;;  %p211_p2 = scmp.ne.s32.totalorder %s338_s2, %s210_s20  ;;  %s40_s17 = int_to_ptr.vmem [resolvable:$true] %s39_s17 }
  0x24   :  { %p214_p3 = scmp.lt.u32.totalorder %s210_s20, %s338_s2 }
  0x26   :  { %p216_p4 = pnand %p214_p3, %p211_p2 }
  0x28   :  { %219 = shalt.err (!%p216_p4)
}
  0x29   :  { %s220_s26 = scalar_lea.vmem %s40_s17, 128  ;;  %p225_p6 = scmp.lt.s32.totalorder %s40_s17, %s40_s17 }
  0x2a   :  { %p221_p5 = scmp.ne.s32.totalorder %s40_s17, %s220_s26  ;;  %p226_p7 = scmp.lt.s32.totalorder %s220_s26, %s220_s26 }
  0x2c   :  { %p227_p8 = por %p226_p7, %p225_p6 }
  0x2e   :  { %p228_p9 = pnand %p227_p8, %p221_p5 }
  0x30   :  { %231 = shalt.err (!%p228_p9)
}
  0x31   :  { %42 = dma.hbm_to_vmem [thread:$0]  %s338_s2, 128, %s40_s17, [#allocation6]  }
  0x32   :  { %242 = dma.done.wait [#allocation3], 128  }
  0x33   :  { %243 = vsyncadd [#allocation3], 4294967168 }
  0x34   :  { %244 = dma.done.wait [#allocation6], 256  }
  0x35   :  { %245 = vsyncadd [#allocation6], 4294967040  ;;  %vm70_vm0 = vcmask 130048   ;;  %vm57_vm1 = vcmask 125952   ;;  %v82_v0 = vld [vmem:[#allocation7] sm:$0xff]  ;;  %vm95_vm2 = vcmask 57344  }
  0x36   :  { %v56_v1 = vld [vmem:[#allocation2] sm:$0xf]  ;;  %v83_v3 = vsel %vm70_vm0, %v82_v0, 0.0  ;;  %v69_v5 = vld [vmem:[#allocation5] sm:$0xff]  ;;  %s232_s24 = scalar_lea.hbm %s341_s5, 16 }
  0x37   :  { %v94_v2 = vld [vmem:[%s339_s3] sm:$0x1]  ;;  %v58_v4 = vsel %vm57_vm1, %v56_v1, 0.0  ;;  %84 = vadd.xlane.f32.xlu1 %v83_v3  ;;  %v71_v7 = vsel %vm70_vm0, %v69_v5, 0.0  ;;  %p233_p10 = scmp.ne.s32.totalorder %s341_s5, %s232_s24  ;;  %p236_p11 = scmp.lt.u32.totalorder %s232_s24, %s341_s5 }
  0x38   :  { %59 = vadd.xlane.f32.xlu0 %v58_v4  ;;  %v96_v6 = vsel %vm95_vm2, %v94_v2, 0.0  ;;  %v107_v8 = vld [vmem:[%s340_s4] sm:$0x1] }
  0x39   :  { %v108_v9 = vsel %vm95_vm2, %v107_v8, 0.0  ;;  %p238_p12 = pnand %p236_p11, %p233_p10 }
  0x3b   :  { %97 = vadd.xlane.f32.xlu1 %v96_v6 }
  0x3c   :  { %72 = vadd.xlane.f32.xlu0 %v71_v7 }
  0x40   :  { %109 = vadd.xlane.f32.xlu0 %v108_v9 }
  0xc4   :  { %v85_v10 = vpop.xlane.xlu1 %84 }
  0xc5   :  { %v60_v11 = vpop.xlane.xlu0 %59  ;;  %v86_v12 = vrot.slane %v85_v10, 4 }
  0xc6   :  { %v61_v13 = vrot.slane %v60_v11, 4 }
  0xc7   :  { %v87_v14 = vadd.f32 %v86_v12, %v85_v10 }
  0xc8   :  { %v62_v15 = vadd.f32 %v61_v13, %v60_v11  ;;  %v98_v16 = vpop.xlane.xlu1 %97 }
  0xc9   :  { %v73_v17 = vpop.xlane.xlu0 %72  ;;  %v88_v18 = vrot.slane %v87_v14, 2  ;;  %v99_v20 = vrot.slane %v98_v16, 4 }
  0xca   :  { %v63_v19 = vrot.slane %v62_v15, 2  ;;  %v74_v21 = vrot.slane %v73_v17, 4 }
  0xcb   :  { %v100_v22 = vadd.f32 %v99_v20, %v98_v16  ;;  %v89_v26 = vadd.f32 %v88_v18, %v87_v14 }
  0xcc   :  { %v75_v23 = vadd.f32 %v74_v21, %v73_v17  ;;  %v64_v24 = vadd.f32 %v63_v19, %v62_v15 }
  0xcd   :  { %v110_v25 = vpop.xlane.xlu0 %109  ;;  %v101_v27 = vrot.slane %v100_v22, 2  ;;  %v90_v35 = vrot.slane %v89_v26, 1 }
  0xce   :  { %v76_v28 = vrot.slane %v75_v23, 2  ;;  %v111_v29 = vrot.slane %v110_v25, 4  ;;  %v65_v30 = vrot.slane %v64_v24, 1 }
  0xcf   :  { %v102_v31 = vadd.f32 %v101_v27, %v100_v22  ;;  %v91_v42 = vadd.f32 %v90_v35, %v89_v26 }
  0xd0   :  { %v112_v32 = vadd.f32 %v111_v29, %v110_v25  ;;  %v66_v33 = vadd.f32 %v65_v30, %v64_v24  ;;  %v77_v34 = vadd.f32 %v76_v28, %v75_v23 }
  0xd1   :  { %v103_v38 = vrot.slane %v102_v31, 1 }
  0xd2   :  { %v113_v36 = vrot.slane %v112_v32, 2  ;;  %148 = vpush %v66_v33  ;;  %v78_v37 = vrot.slane %v77_v34, 1 }
  0xd3   :  { %v104_v41 = vadd.f32 %v103_v38, %v102_v31 }
  0xd4   :  { %v114_v39 = vadd.f32 %v113_v36, %v112_v32  ;;  %v79_v40 = vadd.f32 %v78_v37, %v77_v34 }
  0xd6   :  { %150 = vpush %v79_v40  ;;  %v115_v43 = vrot.slane %v114_v39, 1 }
  0xd7   :  { %152 = vpush %v91_v42 }
  0xd8   :  { %154 = vpush %v104_v41  ;;  %v116_v44 = vadd.f32 %v115_v43, %v114_v39 }
  0xda   :  { %156 = vpush %v116_v44 }
 0x103   :  { %s149_s3 = spop %148 }
 0x104   :  { %s68_s14 = smul.f32 0.25, %s149_s3 }
 0x107   :  { %s151_s4 = spop %150 }
 0x108   :  { %s153_s30 = spop %152  ;;  %s81_s13 = smul.f32 0.125, %s151_s4 }
 0x109   :  { %s155_s6 = spop %154  ;;  %s93_s10 = smul.f32 0.125, %s153_s30 }
 0x10a   :  { %s106_s7 = smul.f32 0.125, %s155_s6  ;;  %s121_s1 = sadd.f32 %s81_s13, %s68_s14 }
 0x10b   :  { %s157_s8 = spop %156 }
 0x10c   :  { %s118_s9 = smul.f32 0.125, %s157_s8 }
 0x10e   :  { %s119_s11 = sadd.f32 %s118_s9, %s106_s7 }
 0x110   :  { %s120_s12 = sadd.f32 %s119_s11, %s93_s10 }
 0x111   :  { %s122_s15 = sadd.f32 %s121_s1, %s119_s11 }
 0x112   :  { %v123_v45 = vstv %s120_s12 }
 0x113   :  { %164 = vrcp.f32 %v123_v45 }
 0x11d   :  { %v165_v46 = vpop.eup %164 }
 0x11e   :  { %158 = vpush %v165_v46 }
 0x14f   :  { %s159_s16 = spop %158 }
 0x150   :  { %s126_s17 = smul.f32 %s159_s16, %s122_s15 }
 0x152   :  { %s147_s18 = sadd.f32 -0.5, %s126_s17 }
 0x154   :  { %s128_s19 = smul.f32 %s147_s18, %s147_s18 }
 0x156   :  { %s129_s20 = smul.f32 5.0, %s128_s19 }
 0x158   :  { %131 = sst [smem:[#allocation8]] %s129_s20 }
 0x159   :  { %241 = shalt.err (!%p238_p12)
}
 0x15a   :  { %s251_s27 = smov [#allocation8]  }
 0x15b   :  { %139 = dma.smem_to_hbm %s251_s27, 16, %s341_s5, [#allocation4]  }
 0x15c   :  { %246 = dma.done.wait [#allocation4], 16  }
 0x15d   :  { %247 = vsyncadd [#allocation4], 4294967280 }
 0x15e   :  { %143 = sfence }
 0x15f   :  { %144 = vsyncpa [#allocation3], 1 }
 0x160   :  { %145 = vsyncpa [#allocation6], 1 }
 0x161   :  { %146 = vsyncpa [#allocation4], 1 }

</bundles_post_ra>
